<compile_context>
chip_gen: v5e
topology: v5e:2x2
jax: 0.10.0
libtpu: 0.0.40
codegen_flags: <defaults>
</compile_context>

<pallas_src>
import jax
import jax.numpy as jnp
from jax.experimental import pallas as pl
from jax.experimental.pallas import tpu as pltpu


def _upsample_matmul_kernel(x_ref, r_ref, o_ref):
    """o = x @ R, R a 0/1 one-hot replication matrix (pure copy semantics)."""
    x = x_ref[...]
    rep = r_ref[...]  # bf16 0/1 matrix (constant index_map -> VMEM resident)
    if x.dtype == jnp.bfloat16:
        acc = jnp.dot(x, rep, preferred_element_type=jnp.float32)
    else:
        # Exact f32 path: x == a + b + c with a, b, c each exactly representable
        # in bf16 (every residual has <= 8 significand bits).  One-hot R => the
        # f32-accumulated sum of the three bf16 matmuls equals x bit-exactly
        # for normal floats (subnormals/inf are edge cases, irrelevant here).
        a = x.astype(jnp.bfloat16)
        r1 = x - a.astype(jnp.float32)
        b = r1.astype(jnp.bfloat16)
        c = (r1 - b.astype(jnp.float32)).astype(jnp.bfloat16)
        acc = (jnp.dot(a, rep, preferred_element_type=jnp.float32)
               + jnp.dot(b, rep, preferred_element_type=jnp.float32)
               + jnp.dot(c, rep, preferred_element_type=jnp.float32))
    o_ref[...] = acc.astype(o_ref.dtype)


def _normalize_scale(scale_factor):
    if isinstance(scale_factor, (tuple, list)):
        if len(scale_factor) != 2:
            raise ValueError("expected a scalar or 2-tuple scale_factor for NCHW input")
        factors = tuple(scale_factor)
    else:
        factors = (scale_factor, scale_factor)
    out = []
    for f in factors:
        ff = float(f)
        if not ff.is_integer() or ff < 1:
            # TODO(synk): fractional 'nearest' scales (general floor index map) not implemented.
            raise NotImplementedError(f"only integer scale factors >= 1 are supported, got {f}")
        out.append(int(ff))
    return tuple(out)


def _replication_matrix(w, g, sh, sw, dtype):
    """R[j*W + w, (j*sh + kh)*OW + ow] = 1 iff w == ow // sw  (OW = W*sw)."""
    ow = w * sw
    col = jnp.arange(g * sh * ow, dtype=jnp.int32)
    src_row = (col // (sh * ow)) * w + (col % ow) // sw
    row = jnp.arange(g * w, dtype=jnp.int32)
    return (row[:, None] == src_row[None, :]).astype(dtype)


_LANE = 128
_ROW_MULT = 16                      # sublane multiple valid for both f32 and bf16 tiles
_TARGET_TILE_BYTES = 3 * 1024 * 1024
_R_CAP_BYTES = 4 * 1024 * 1024      # cap for the bf16 replication matrix
_MAX_LANE_OUT = 1024


def _choose_group(h, w, sh, sw):
    """Divisor g of H grouping g input rows per tile row -> lane-dense output."""
    lane0 = sh * sw * w
    divisors = [g for g in range(1, h + 1) if h % g == 0]

    def fits(g):
        lanes = g * lane0
        return lanes <= _MAX_LANE_OUT and (g * w) * lanes * 2 <= _R_CAP_BYTES

    cand = [g for g in divisors if fits(g)]
    if not cand:
        return 1
    for g in cand:                  # prefer fully lane-dense stores (multiple of 128)
        if (g * lane0) % _LANE == 0:
            return g
    for g in cand:                  # else at least one full vreg of lanes
        if g * lane0 >= _LANE:
            return g
    return cand[-1]


def _choose_tile_rows(r_in, k_in, lane_out, itemsize):
    """Input rows per grid step: large, VMEM-bounded tiles, >=2 steps when possible."""
    per_row = (k_in + lane_out) * itemsize
    rows = _TARGET_TILE_BYTES // max(1, per_row)
    rows = max(_ROW_MULT, (rows // _ROW_MULT) * _ROW_MULT)
    if rows >= r_in:
        if r_in >= 2 * _ROW_MULT:
            # Split into >= 2 grid steps so both v7x TensorCores get a share
            # of the "parallel" axis.
            half = -(-r_in // 2)
            rows = -(-half // _ROW_MULT) * _ROW_MULT
        else:
            rows = r_in
    return min(rows, r_in)


def upsample_nearest(x, scale_factor=None, size=None):
    """Pallas TPU equivalent of F.interpolate(x, ..., mode='nearest'), NCHW."""
    if x.ndim != 4:
        # TODO(synk): 5-D NCDHW ('nearest' in 3-D) would need a depth-replicating
        # index_map / extra grid axis; not implemented here.
        raise NotImplementedError("only 4-D NCHW input is supported")
    n, c, h, w = x.shape

    if scale_factor is not None:
        sh, sw = _normalize_scale(scale_factor)
    elif size is not None:
        size2 = (size, size) if isinstance(size, int) else tuple(size)
        if len(size2) != 2 or size2[0] % h != 0 or size2[1] % w != 0:
            raise NotImplementedError("size= must be an integer multiple of the input size")
        sh, sw = size2[0] // h, size2[1] // w
    else:
        raise ValueError("either scale_factor or size must be given")

    if not jnp.issubdtype(x.dtype, jnp.floating):
        # TODO(synk): integer dtypes need a pure data-movement path (DMA gather);
        # the v7x MXU has no integer mode.
        raise NotImplementedError("only floating-point inputs are supported")
    if sh == 1 and sw == 1:
        return x

    compute_dtype = jnp.bfloat16 if x.dtype == jnp.bfloat16 else jnp.float32
    itemsize = jnp.dtype(compute_dtype).itemsize

    g = _choose_group(h, w, sh, sw)
    r_in = (n * c * h) // g          # fused (N, C, H/g) row axis
    k_in = g * w                     # contraction dim (g rows of W each)
    lane_out = g * sh * sw * w       # lane width of each output tile row
    oh, ow = h * sh, w * sw

    x2 = x.astype(compute_dtype).reshape(r_in, k_in)          # free reshape
    rep = _replication_matrix(w, g, sh, sw, jnp.bfloat16)     # (k_in, lane_out)

    rows = _choose_tile_rows(r_in, k_in, lane_out, itemsize)
    grid = (pl.cdiv(r_in, rows),)

    y = pl.pallas_call(
        _upsample_matmul_kernel,
        out_shape=jax.ShapeDtypeStruct((r_in, lane_out), compute_dtype),
        grid_spec=pltpu.PrefetchScalarGridSpec(
            num_scalar_prefetch=0,
            grid=grid,
            in_specs=[
                pl.BlockSpec((rows, k_in), lambda i: (i, 0)),
                # Constant block index -> fetched once, stays VMEM resident.
                pl.BlockSpec((k_in, lane_out), lambda i: (0, 0)),
            ],
            out_specs=pl.BlockSpec((rows, lane_out), lambda i: (i, 0)),
        ),
        compiler_params=pltpu.CompilerParams(
            dimension_semantics=("parallel",),
            vmem_limit_bytes=64 * 1024 * 1024,
        ),
    )(x2, rep)

    # Row-major compatible (free) reshape back to NCHW.
    y = y.reshape(n, c, oh, ow)
    return y if y.dtype == x.dtype else y.astype(x.dtype)


class Upsample:
    """Mirror of the PyTorch `Upsample` nn.Module from DeMoSeg (forward only)."""

    def __init__(self, size=None, scale_factor=None, mode="nearest", align_corners=False):
        self.size = size
        self.scale_factor = scale_factor
        self.mode = mode
        self.align_corners = align_corners

    def __call__(self, x):
        # TODO(synk): only integer-scale 'nearest' (the module's default mode) is
        # implemented; 'bilinear'/'trilinear' interpolation paths are not.
        assert self.mode == "nearest", "only mode='nearest' is implemented"
        return upsample_nearest(x, scale_factor=self.scale_factor, size=self.size)


if __name__ == "__main__":
    key = jax.random.PRNGKey(0)
    x = jax.random.normal(key, (2, 4, 16, 16), dtype=jnp.float32)

    # f32, scale 2 (the module's typical decoder use).
    up = Upsample(scale_factor=2, mode="nearest")
    y = jax.block_until_ready(up(x))
    ref = jnp.repeat(jnp.repeat(x, 2, axis=2), 2, axis=3)
    assert y.shape == (2, 4, 32, 32), y.shape
    assert y.dtype == x.dtype
    assert jnp.allclose(y, ref, rtol=1e-6, atol=1e-6), "f32 mismatch vs reference"

    # Native bf16 path (single bf16 MXU matmul) is bit-exact.
    xb = x.astype(jnp.bfloat16)
    yb = jax.block_until_ready(upsample_nearest(xb, scale_factor=2))
    refb = jnp.repeat(jnp.repeat(xb, 2, axis=2), 2, axis=3)
    assert yb.dtype == jnp.bfloat16
    assert jnp.array_equal(yb, refb), "bf16 mismatch vs reference"

    # Anisotropic integer scale factors.
    y23 = jax.block_until_ready(upsample_nearest(x, scale_factor=(2, 3)))
    ref23 = jnp.repeat(jnp.repeat(x, 2, axis=2), 3, axis=3)
    assert y23.shape == (2, 4, 32, 48), y23.shape
    assert jnp.allclose(y23, ref23, rtol=1e-6, atol=1e-6), "(2,3) mismatch vs reference"

    # size= path of the module.
    ysz = jax.block_until_ready(Upsample(size=(32, 32), mode="nearest")(x))
    assert jnp.allclose(ysz, ref, rtol=1e-6, atol=1e-6), "size= mismatch vs reference"

    print("KERNEL_OK")
</pallas_src>

<mosaic_0001>
module attributes {stable_mosaic.version = 11 : i64} {
  func.func @_upsample_matmul_kernel(%arg0: i32, %arg1: memref<32x32xf32, #tpu.memory_space<vmem>>, %arg2: memref<32x128xbf16, #tpu.memory_space<vmem>>, %arg3: memref<32x128xf32, #tpu.memory_space<vmem>>) attributes {dimension_semantics = [#tpu.dimension_semantics<parallel>], iteration_bounds = array<i64: 2>, scalar_prefetch = 0 : i64, scratch_operands = 0 : i64, tpu.core_type = #tpu.core_type<tc>, window_params = [{transform_indices = @transform_0, window_bounds = array<i64: 32, 32>}, {pipeline_mode = #tpu.pipeline_mode<synchronous>, transform_indices = @transform_1, window_bounds = array<i64: 32, 128>}, {transform_indices = @transform_2, window_bounds = array<i64: 32, 128>}]} {
    %c0 = arith.constant 0 : index
    %c0_0 = arith.constant 0 : index
    %0 = vector.load %arg1[%c0, %c0_0] : memref<32x32xf32, #tpu.memory_space<vmem>>, vector<32x32xf32>
    %c0_1 = arith.constant 0 : index
    %c0_2 = arith.constant 0 : index
    %1 = vector.load %arg2[%c0_1, %c0_2] : memref<32x128xbf16, #tpu.memory_space<vmem>>, vector<32x128xbf16>
    %2 = arith.truncf %0 : vector<32x32xf32> to vector<32x32xbf16>
    %3 = arith.extf %2 : vector<32x32xbf16> to vector<32x32xf32>
    %4 = arith.subf %0, %3 : vector<32x32xf32>
    %5 = arith.truncf %4 : vector<32x32xf32> to vector<32x32xbf16>
    %6 = arith.extf %5 : vector<32x32xbf16> to vector<32x32xf32>
    %7 = arith.subf %4, %6 : vector<32x32xf32>
    %8 = arith.truncf %7 : vector<32x32xf32> to vector<32x32xbf16>
    %cst = arith.constant dense<0.000000e+00> : vector<32x128xf32>
    %9 = tpu.matmul %2, %1, %cst {dimension_numbers = #tpu.dot_dimension_numbers<[1], [0], [0], [1], [0, 0, 1, 1], [], []>} : vector<32x32xbf16>, vector<32x128xbf16>, vector<32x128xf32> -> vector<32x128xf32>
    %cst_3 = arith.constant dense<0.000000e+00> : vector<32x128xf32>
    %10 = tpu.matmul %5, %1, %cst_3 {dimension_numbers = #tpu.dot_dimension_numbers<[1], [0], [0], [1], [0, 0, 1, 1], [], []>} : vector<32x32xbf16>, vector<32x128xbf16>, vector<32x128xf32> -> vector<32x128xf32>
    %11 = arith.addf %9, %10 : vector<32x128xf32>
    %cst_4 = arith.constant dense<0.000000e+00> : vector<32x128xf32>
    %12 = tpu.matmul %8, %1, %cst_4 {dimension_numbers = #tpu.dot_dimension_numbers<[1], [0], [0], [1], [0, 0, 1, 1], [], []>} : vector<32x32xbf16>, vector<32x128xbf16>, vector<32x128xf32> -> vector<32x128xf32>
    %13 = arith.addf %11, %12 : vector<32x128xf32>
    %c0_5 = arith.constant 0 : index
    %c0_6 = arith.constant 0 : index
    %14 = vector.load %arg3[%c0_5, %c0_6] : memref<32x128xf32, #tpu.memory_space<vmem>>, vector<32x128xf32>
    tpu.vector_store %arg3[%c0_5, %c0_6], %13 {strides = array<i32>} : memref<32x128xf32, #tpu.memory_space<vmem>>, vector<32x128xf32>,
    return
  }
  func.func @transform_0(%arg0: i32) -> (i32, i32) {
    %c0_i32 = arith.constant 0 : i32
    %c0_i32_0 = arith.constant 0 : i32
    return %arg0, %c0_i32 : i32, i32
  }
  func.func @transform_1(%arg0: i32) -> (i32, i32) {
    %c0_i32 = arith.constant 0 : i32
    %c0_i32_0 = arith.constant 0 : i32
    %c0_i32_1 = arith.constant 0 : i32
    return %c0_i32, %c0_i32_0 : i32, i32
  }
  func.func @transform_2(%arg0: i32) -> (i32, i32) {
    %c0_i32 = arith.constant 0 : i32
    %c0_i32_0 = arith.constant 0 : i32
    return %arg0, %c0_i32 : i32, i32
  }
}

</mosaic_0001>

<bundles_post_ra>
// kernel: tpu_custom_call.1
= control target key start
LH: loop header
LB: loop body
LE: loop exit
PB: predicated region body
PF: predicated region fallthrough
CT: control target
= control target key end

     0   :  { %7 = vsyncpa [#allocation3], 0  ;;  %s627_s0 = inlined_call_operand.vmem [shape: f32[64,32], index: 0, kind: input, shape index: {}]   ;;  %s628_s1 = inlined_call_operand.vmem [shape: bf16[32,128], index: 1, kind: input, shape index: {}]   ;;  %s629_s2 = inlined_call_operand.hbm [shape: f32[64,128], index: 2, kind: output, shape index: {}]  }
   0x1   :  { %9 = vsyncpa [#allocation3 + $0x1], 0  ;;  %s527_s9 = smov 0   ;;  %s529_s10 = smov 0  }
   0x2   :  { %s531_s11 = smov 0   ;;  %s533_s12 = smov 0  }
   0x3 LB: > { %s548_s13 = sadd.s32 4294967295, %s508_s12   ;;  %s374_s14 = sadd.s32 4294967294, %s508_s12   ;;  %s508_s12 = sphi %s533_s12, %s635_s12   ;;  %s504_s11 = sphi %s531_s11, %s634_s11   ;;  %s500_s10 = sphi %s529_s10, %s633_s10   ;;  %s496_s9 = sphi %s527_s9, %s632_s9  }
   0x4   : > { %s552_s15 = sadd.s32 1, %s508_s12   ;;  %s69_s16 = sadd.s32 1, %s504_s11 }
   0x5   : > { %s66_s17 = ssub.s32 %s508_s12, %s552_s15  ;;  %p79_p0 = scmp.ne.s32.totalorder %s504_s11, %s500_s10 }
   0x6   : > { %p67_p1 = scmp.eq.s32.totalorder %s66_s17, 0  ;;  %p80_p2 = scmp.eq.s32.totalorder %s548_s13, 1 }
   0x7   : > { %p85_p3 = scmp.ne.s32.totalorder %s500_s10, %s496_s9  ;;  %p86_p4 = scmp.eq.s32.totalorder %s374_s14, 1 }
   0x8   : > { %s563_s18 = scalar_select %p67_p1, %s504_s11, %s69_s16  }
   0x9   : > { %p565_p5 = por %p80_p2, %p79_p0  ;;  %p569_p6 = por %p86_p4, %p85_p3 }
   0xa   : > { %p377_p7 = scmp.ge.s32.totalorder %s508_s12, 1  ;;  %p116_p8 = scmp.lt.s32.totalorder %s508_s12, 3 }
   0xc   : > { %p117_p9 = pnand %p377_p7, %p116_p8 }
   0xd   : > { %s379_s23 = sshll.u32 (!%p117_p9), %s548_s13, 2  ;;  %s135_s30 = sand.u32 (!%p117_p9), 1, %s500_s10  }
   0xe   : > { %120 = sbr.rel (%p117_p9) target bundleno = 199 (0xc7), region = 28  ;;  %p139_p10 = scmp.lt.s32.totalorder (!%p117_p9), %s379_s23, 7 }
   0xf   : > { %s378_s3 = sshll.u32 (!%p117_p9), %s135_s30, 5  ;;  %s402_s5 = sshll.u32 (!%p117_p9), %s548_s13, 5 }
  0x10   : > { %s137_s4 = scalar_lea.vmem (!%p117_p9), [#allocation2], %s378_s3  ;;  %s308_s8 = scalar_lea.hbm (!%p117_p9), %s629_s2, %s402_s5 }
  0x11   : > { %s309_s14 = sshll.u32 (!%p117_p9), %s137_s4, 4  ;;  %s311_s16 = sshll.u32 (!%p117_p9), %s308_s8, 4  ;;  %s310_s14 = int_to_ptr.vmem [resolvable:$true] %s309_s14  ;;  %s312_s16 = int_to_ptr.hbm [resolvable:$true] %s311_s16 }
  0x12   : > { %s297_s13 = scalar_lea.sflag (!%p117_p9), [#allocation3], %s135_s30  ;;  %s460_s17 = sshra.s32 (!%p117_p9), %s312_s16, 4  ;;  %s461_s17 = int_to_ptr.hbm [resolvable:$true] %s460_s17 }
  0x13   : > { %v401_v0 = vld [vmem:[%s628_s1 + $0x8] sm:$0xff]  ;;  %v400_v1 = vld [vmem:[%s628_s1] sm:$0xff]  ;;  %s637_s23 = smov (!%p139_p10, %s379_s23), 7  ;;  %vm202_vm0 = vcmask 261120   ;;  %s462_s21 = scalar_lea.hbm %s461_s17, 32 }
  0x14   : > { %250 = vmatpush.bf16.msra.mxu1 %v401_v0  ;;  %215 = vmatpush.bf16.msra.mxu0 %v401_v0  ;;  %s380_s26 = sshll.u32 %s637_s23, 3  ;;  %p463_p11 = scmp.ne.s32.totalorder %s461_s17, %s462_s21 }
  0x15   : > { %275 = vmatpush.bf16.msra.mxu2 %v401_v0  ;;  %403 = vmatpush.bf16.msra.mxu3 %v401_v0  ;;  %s142_s29 = scalar_lea.vmem %s627_s0, %s380_s26  ;;  %s466_s24 = scalar_lea.hbm %s629_s2, 64 }
  0x16   : > { %v146_v2 = vld [vmem:[%s142_s29] sm:$0xff]  ;;  %v147_v3 = vld [vmem:[%s142_s29 + $0x8] sm:$0xff]  ;;  %v148_v4 = vld [vmem:[%s142_s29 + $0x10] sm:$0xff]  ;;  %p464_p12 = pnand %p463_p11, %p565_p5  ;;  %p467_p0 = scmp.lt.s32.totalorder %s461_s17, %s629_s2 }
  0x17   : > { %v154_v5 = vpack.c.bf16 %v146_v2, %v146_v2  ;;  %v155_v6 = vpack.c.bf16 %v147_v3, %v147_v3  ;;  %v149_v7 = vld [vmem:[%s142_s29 + $0x18] sm:$0xff]  ;;  %v156_v8 = vpack.c.bf16 %v148_v4, %v148_v4  ;;  %p468_p1 = scmp.lt.s32.totalorder %s466_s24, %s462_s21 }
  0x18   : > { %251 = vmatpush.bf16.msra.mxu1 %v400_v1  ;;  %216 = vmatpush.bf16.msra.mxu0 %v400_v1  ;;  %v157_v9 = vpack.c.bf16 %v149_v7, %v149_v7  ;;  %p465_p13 = pneg %p464_p12 }
  0x19   : > { %276 = vmatpush.bf16.msra.mxu2 %v400_v1  ;;  %404 = vmatpush.bf16.msra.mxu3 %v400_v1  ;;  %v158_v10 = vunpack.c.l.bf16 %v154_v5  ;;  %v159_v11 = vunpack.c.l.bf16 %v155_v6  ;;  %v232_v12 = vunpack.c.l.b16 %v154_v5  ;;  %v233_v13 = vunpack.c.l.b16 %v155_v6  ;;  %p469_p2 = por %p468_p1, %p467_p0 }
  0x1a   : > { %v160_v14 = vunpack.c.l.bf16 %v156_v8  ;;  %v161_v15 = vunpack.c.l.bf16 %v157_v9  ;;  %v234_v36 = vunpack.c.l.b16 %v156_v8  ;;  %v235_v37 = vunpack.c.l.b16 %v157_v9 }
  0x1b   : > { %v236_v16 = vpack.c.b16 %v233_v13, %v232_v12  ;;  %v162_v17 = vsub.f32 %v146_v2, %v158_v10  ;;  %v163_v18 = vsub.f32 %v147_v3, %v159_v11  ;;  %p470_p3 = pnand %p469_p2, %p465_p13 }
  0x1c   : > { %v164_v19 = vsub.f32 %v148_v4, %v160_v14  ;;  %v165_v20 = vsub.f32 %v149_v7, %v161_v15  ;;  %v237_v38 = vpack.c.b16 %v235_v37, %v234_v36 }
  0x1d   : > { %391 = vmatmul.msk.bf16.vlgmr.msra.gmra.mxu1 %vm202_vm0, %v236_v16  ;;  %v166_v21 = vpack.c.bf16 %v162_v17, %v162_v17  ;;  %v167_v22 = vpack.c.bf16 %v163_v18, %v163_v18 }
  0x1e   : > { %v168_v23 = vpack.c.bf16 %v164_v19, %v164_v19  ;;  %v169_v24 = vpack.c.bf16 %v165_v20, %v165_v20 }
  0x1f   : > { %v184_v25 = vunpack.c.l.b16 %v166_v21  ;;  %v185_v26 = vunpack.c.l.b16 %v167_v22  ;;  %v170_v27 = vunpack.c.l.bf16 %v166_v21  ;;  %v171_v28 = vunpack.c.l.bf16 %v167_v22 }
  0x20   : > { %v186_v29 = vunpack.c.l.b16 %v168_v23  ;;  %v187_v30 = vunpack.c.l.b16 %v169_v24  ;;  %v172_v39 = vunpack.c.l.bf16 %v168_v23  ;;  %v173_v40 = vunpack.c.l.bf16 %v169_v24 }
  0x21   : > { %v188_v31 = vpack.c.b16 %v185_v26, %v184_v25  ;;  %v174_v32 = vsub.f32 %v162_v17, %v170_v27  ;;  %v175_v33 = vsub.f32 %v163_v18, %v171_v28 }
  0x22   : > { %v189_v34 = vpack.c.b16 %v187_v30, %v186_v29  ;;  %v176_v41 = vsub.f32 %v164_v19, %v172_v39  ;;  %v177_v42 = vsub.f32 %v165_v20, %v173_v40 }
  0x23   : > { %389 = vmatmul.msk.bf16.vlgmr.msra.gmra.mxu0 %vm202_vm0, %v188_v31  ;;  %v178_v35 = vpack.c.bf16 %v175_v33, %v174_v32 }
  0x24   : > { %390 = vmatmul.msk.bf16.vlgmr.msra.gmra.mxu3 %vm202_vm0, %v189_v34  ;;  %v179_v43 = vpack.c.bf16 %v177_v42, %v176_v41 }
  0x25   : > { %393 = vmatmul.msk.bf16.vlgmr.msra.gmra.mxu2 %vm202_vm0, %v178_v35 }
  0x2d   : > { %392 = vmatmul.msk.bf16.gmra.mxu1 %vm202_vm0, %v237_v38 }
  0x35   : > { %394 = vmatmul.msk.bf16.gmra.mxu2 %vm202_vm0, %v179_v43 }
  0x9a   : > { %v253_v44 = vpop.f32.mrf.mxu1 }
  0xa0   : > { %v218_v45 = vpop.f32.mrf.mxu0 }
  0xa1   : > { %v254_v46 = vadd.f32 %v253_v44, %v218_v45 }
  0xa2   : > { %v255_v47 = vpop.f32.mrf.mxu1 }
  0xa7   : > { %v223_v54 = vpop.f32.mrf.mxu3 }
  0xa8   : > { %v278_v48 = vpop.f32.mrf.mxu2  ;;  %v220_v50 = vpop.f32.mrf.mxu0 }
  0xa9   : > { %v288_v49 = vadd.f32 %v278_v48, %v254_v46  ;;  %v256_v51 = vadd.f32 %v255_v47, %v220_v50 }
  0xaa   : > { %v258_v55 = vpop.f32.mrf.mxu1 }
  0xab   : > { %292 = vst [vmem:[%s137_s4] sm:$0xff] %v288_v49  ;;  %v259_v56 = vadd.f32 %v258_v55, %v223_v54 }
  0xaf   : > { %v225_v59 = vpop.f32.mrf.mxu3 }
  0xb0   : > { %v280_v52 = vpop.f32.mrf.mxu2 }
  0xb1   : > { %v289_v53 = vadd.f32 %v280_v52, %v256_v51 }
  0xb2   : > { %v260_v60 = vpop.f32.mrf.mxu1 }
  0xb3   : > { %293 = vst [vmem:[%s137_s4 + $0x8] sm:$0xff] %v289_v53  ;;  %v261_v61 = vadd.f32 %v260_v60, %v225_v59 }
  0xb8   : > { %v283_v57 = vpop.f32.mrf.mxu2 }
  0xb9   : > { %v290_v58 = vadd.f32 %v283_v57, %v259_v56 }
  0xbb   : > { %294 = vst [vmem:[%s137_s4 + $0x10] sm:$0xff] %v290_v58 }
  0xc0   : > { %v285_v62 = vpop.f32.mrf.mxu2 }
  0xc1   : > { %v291_v63 = vadd.f32 %v285_v62, %v261_v61 }
  0xc3   : > { %295 = vst [vmem:[%s137_s4 + $0x18] sm:$0xff] %v291_v63 }
  0xc4   : > { %473 = shalt.err (!%p470_p3)
}
  0xc5   : > { %s510_s27 = smov 128   ;;  %s511_s28 = smov 8  }
  0xc6   : > { %405 = dma.vmem_to_hbm [thread:$0]  (%p565_p5), %s310_s14, 512, %s312_s16, %s297_s13, %s510_s27, %s510_s27, %s511_s28  }
  0xc7 PF: > { %p411_p4 = scmp.ge.s32.totalorder %s508_s12, 2  ;;  %s326_s29 = sand.u32 1, %s496_s9  }
  0xc8   : > { %s327_s30 = scalar_lea.sflag [#allocation3], %s326_s29 }
  0xc9   : > { %p408_p7 = pnand %p411_p4, %p569_p6 }
  0xcb   : > { %p409_p8 = pneg %p408_p7 }
  0xcd   : > { %491 = dma.done.wait (%p409_p8), %s327_s30, 512  }
  0xce   : > { %493 = vsyncadd (%p409_p8), %s327_s30, 4294966784  ;;  %p12_p9 = scmp.ge.s32.totalorder %s552_s15, 4   ;;  %s632_s9 = smov %s500_s10 }
  0xcf   : > { %s633_s10 = smov %s504_s11  ;;  %s634_s11 = smov %s563_s18 }
  0xd0   : > { %s635_s12 = smov %s552_s15  ;;  %14 = sbr.rel (!%p12_p9) target bundleno = 3 (0x3), region = 63 }
  0xd5   :  { %333 = vsyncpa [#allocation3], 1 }
  0xd6   :  { %335 = vsyncpa [#allocation3 + $0x1], 1 }

</bundles_post_ra>
